<compile_context>
chip_gen: v5e
topology: v5e:2x2
jax: 0.10.0
libtpu: 0.0.40
codegen_flags: <defaults>
</compile_context>

<pallas_src>
import math
from functools import partial

import jax
import jax.numpy as jnp
from jax import lax
from jax.experimental import pallas as pl
from jax.experimental.pallas import tpu as pltpu


# ----------------------------------------------------------------------------
# Tiling helper: largest tile <= pref that is a multiple of `align` and divides
# `dim` evenly; otherwise use the full extent (always legal for a BlockSpec).
# ----------------------------------------------------------------------------
def _pick_tile(dim, pref, align):
    if dim <= pref or dim % align != 0:
        return dim
    t = (pref // align) * align
    while dim % t != 0:
        t -= align
    return t


# ----------------------------------------------------------------------------
# Kernel: one (tm, tn) output tile, reduced over the K grid axis.
# ----------------------------------------------------------------------------
def _eq_linear_kernel(x_ref, w_ref, b_ref, o_ref, acc_ref, *,
                      scale, lr_mul, leaky_slope):
    k = pl.program_id(2)

    @pl.when(k == 0)
    def _():
        acc_ref[...] = jnp.zeros_like(acc_ref)

    # x tile: (tm, tk) bf16; w tile: (tn, tk) bf16 in native PyTorch layout.
    # Contract on in_dim (axis 1 of both) -> (tm, tn), f32 accumulation on MXU.
    acc_ref[...] += lax.dot_general(
        x_ref[...], w_ref[...],
        dimension_numbers=(((1,), (1,)), ((), ())),
        preferred_element_type=jnp.float32)

    @pl.when(k == pl.num_programs(2) - 1)
    def _():
        # Apply the equalized-lr scale to the small (tm, tn) output, not to the
        # weight; fold in bias * lr_mul and the (optional) LeakyReLU epilogue.
        out = acc_ref[...] * scale + b_ref[...].astype(jnp.float32) * lr_mul
        if leaky_slope is not None:
            out = jnp.where(out >= 0.0, out, leaky_slope * out)
        o_ref[...] = out.astype(o_ref.dtype)


# ----------------------------------------------------------------------------
# Wrapper
# ----------------------------------------------------------------------------
def equalized_linear(x, weight, bias=None, *, lr_mul=1.0, leaky_slope=None,
                     compute_dtype=jnp.bfloat16,
                     tile_m=128, tile_n=256, tile_k=512):
    """x: (..., in_dim); weight: (out_dim, in_dim) PyTorch layout; bias: (out_dim,)."""
    lead = x.shape[:-1]
    din = x.shape[-1]
    dout, din_w = weight.shape
    assert din == din_w, (din, din_w)
    x2 = x.reshape(-1, din)
    b = x2.shape[0]

    scale = 1.0 / math.sqrt(din) * lr_mul

    # bias=None has identical semantics to a zero bias (bias * lr_mul == 0).
    if bias is None:
        bias = jnp.zeros((dout,), jnp.float32)
    b2 = bias.reshape(1, dout).astype(jnp.float32)

    tm = _pick_tile(b, tile_m, 8)
    tn = _pick_tile(dout, tile_n, 128)
    tk = _pick_tile(din, tile_k, 128)
    grid = (b // tm, dout // tn, din // tk)

    xc = x2.astype(compute_dtype)
    wc = weight.astype(compute_dtype)

    out = pl.pallas_call(
        partial(_eq_linear_kernel, scale=scale, lr_mul=lr_mul,
                leaky_slope=leaky_slope),
        out_shape=jax.ShapeDtypeStruct((b, dout), jnp.float32),
        grid_spec=pltpu.PrefetchScalarGridSpec(
            num_scalar_prefetch=0,
            grid=grid,
            in_specs=[
                pl.BlockSpec((tm, tk), lambda i, j, k: (i, k)),   # x
                pl.BlockSpec((tn, tk), lambda i, j, k: (j, k)),   # W (Dout, Din)
                pl.BlockSpec((1, tn), lambda i, j, k: (0, j)),    # bias
            ],
            out_specs=pl.BlockSpec((tm, tn), lambda i, j, k: (i, j)),
            scratch_shapes=[pltpu.VMEM((tm, tn), jnp.float32)],
        ),
        compiler_params=pltpu.CompilerParams(
            dimension_semantics=("parallel", "parallel", "arbitrary")),
    )(xc, wc, b2)

    return out.reshape(*lead, dout)


# ----------------------------------------------------------------------------
# Pure-JAX f32 reference (mirrors the PyTorch module exactly)
# ----------------------------------------------------------------------------
def equalized_linear_ref(x, weight, bias=None, *, lr_mul=1.0, leaky_slope=None):
    din = weight.shape[1]
    scale = 1.0 / math.sqrt(din) * lr_mul
    out = x @ (weight * scale).T
    if bias is not None:
        out = out + bias * lr_mul
    if leaky_slope is not None:
        out = jnp.where(out >= 0.0, out, leaky_slope * out)
    return out


def init_equalized_linear(key, in_dim, out_dim, *, bias=True, bias_init=0.0,
                          lr_mul=1.0):
    """Mirrors EqualizedLinear.__init__: weight = randn(out,in)/lr_mul, bias filled."""
    w = jax.random.normal(key, (out_dim, in_dim), jnp.float32) / lr_mul
    b = jnp.full((out_dim,), float(bias_init), jnp.float32) if bias else None
    return w, b


# ----------------------------------------------------------------------------
if __name__ == "__main__":
    key = jax.random.PRNGKey(0)
    k1, k2, k3, k4 = jax.random.split(key, 4)

    # --- Case 1: mapping-network style layer ---------------------------------
    # (z || label_emb) -> style : B=2, in_dim=33, out_dim=32, lr_mul=0.01,
    # fused LeakyReLU(0.2). Small dims -> full-extent blocks, grid (1,1,1).
    B1, DIN1, DOUT1 = 2, 33, 32
    x1 = jax.random.normal(k1, (B1, DIN1), jnp.float32)
    w1, b1 = init_equalized_linear(k2, DIN1, DOUT1, bias_init=0.0, lr_mul=0.01)
    out1 = equalized_linear(x1, w1, b1, lr_mul=0.01, leaky_slope=0.2)
    out1 = jax.block_until_ready(out1)
    ref1 = equalized_linear_ref(x1, w1, b1, lr_mul=0.01, leaky_slope=0.2)

    assert out1.shape == (B1, DOUT1), out1.shape
    assert bool(jnp.all(jnp.isfinite(out1)))
    assert bool(jnp.allclose(out1, ref1, rtol=5e-2, atol=5e-2)), (
        float(jnp.max(jnp.abs(out1 - ref1))))

    # --- Case 2: modulation-style layer (exercises the M/N/K grid) -----------
    # style -> per-channel modulation: B=16, in_dim=512, out_dim=384,
    # bias_init=1, no activation. tiles: tm=16 (full), tn=128, tk=256
    # -> grid (1, 3, 2): N-parallel tiles + K-reduction with f32 accumulator.
    B2, DIN2, DOUT2 = 16, 512, 384
    x2 = jax.random.normal(k3, (B2, DIN2), jnp.float32)
    w2, b2 = init_equalized_linear(k4, DIN2, DOUT2, bias_init=1.0, lr_mul=1.0)
    out2 = equalized_linear(x2, w2, b2, lr_mul=1.0, leaky_slope=None,
                            tile_n=128, tile_k=256)
    out2 = jax.block_until_ready(out2)
    ref2 = equalized_linear_ref(x2, w2, b2, lr_mul=1.0, leaky_slope=None)

    assert out2.shape == (B2, DOUT2), out2.shape
    assert bool(jnp.all(jnp.isfinite(out2)))
    assert bool(jnp.allclose(out2, ref2, rtol=5e-2, atol=5e-2)), (
        float(jnp.max(jnp.abs(out2 - ref2))))

    print("KERNEL_OK")
</pallas_src>

<mosaic_0001>
module attributes {stable_mosaic.version = 11 : i64} {
  func.func @_eq_linear_kernel(%arg0: i32, %arg1: i32, %arg2: i32, %arg3: memref<2x33xbf16, #tpu.memory_space<vmem>>, %arg4: memref<32x33xbf16, #tpu.memory_space<vmem>>, %arg5: memref<1x32xf32, #tpu.memory_space<vmem>>, %arg6: memref<2x32xf32, #tpu.memory_space<vmem>>, %arg7: memref<2x32xf32, #tpu.memory_space<vmem>>) attributes {dimension_semantics = [#tpu.dimension_semantics<parallel>, #tpu.dimension_semantics<parallel>, #tpu.dimension_semantics<arbitrary>], iteration_bounds = array<i64: 1, 1, 1>, scalar_prefetch = 0 : i64, scratch_operands = 1 : i64, tpu.core_type = #tpu.core_type<tc>, window_params = [{transform_indices = @transform_0, window_bounds = array<i64: 2, 33>}, {transform_indices = @transform_1, window_bounds = array<i64: 32, 33>}, {transform_indices = @transform_2, window_bounds = array<i64: 1, 32>}, {transform_indices = @transform_3, window_bounds = array<i64: 2, 32>}]} {
    %c0_i32 = arith.constant 0 : i32
    %0 = arith.cmpi eq, %arg2, %c0_i32 : i32
    %1 = arith.extui %0 : i1 to i32
    %c0_i32_0 = arith.constant 0 : i32
    %2 = arith.cmpi ne, %1, %c0_i32_0 : i32
    scf.if %2 {
      %cst_10 = arith.constant 0.000000e+00 : f32
      %12 = vector.broadcast %cst_10 : f32 to vector<2x32xf32>
      %c0_11 = arith.constant 0 : index
      %c0_12 = arith.constant 0 : index
      %13 = vector.load %arg7[%c0_11, %c0_12] : memref<2x32xf32, #tpu.memory_space<vmem>>, vector<2x32xf32>
      tpu.vector_store %arg7[%c0_11, %c0_12], %12 {strides = array<i32>} : memref<2x32xf32, #tpu.memory_space<vmem>>, vector<2x32xf32>,
    } else {
    }
    %c0 = arith.constant 0 : index
    %c0_1 = arith.constant 0 : index
    %3 = vector.load %arg7[%c0, %c0_1] : memref<2x32xf32, #tpu.memory_space<vmem>>, vector<2x32xf32>
    %c0_2 = arith.constant 0 : index
    %c0_3 = arith.constant 0 : index
    %4 = vector.load %arg3[%c0_2, %c0_3] : memref<2x33xbf16, #tpu.memory_space<vmem>>, vector<2x33xbf16>
    %c0_4 = arith.constant 0 : index
    %c0_5 = arith.constant 0 : index
    %5 = vector.load %arg4[%c0_4, %c0_5] : memref<32x33xbf16, #tpu.memory_space<vmem>>, vector<32x33xbf16>
    %cst = arith.constant dense<0.000000e+00> : vector<2x32xf32>
    %6 = tpu.matmul %4, %5, %cst {dimension_numbers = #tpu.dot_dimension_numbers<[1], [1], [0], [0], [0, 0, 1, 0], [], []>} : vector<2x33xbf16>, vector<32x33xbf16>, vector<2x32xf32> -> vector<2x32xf32>
    %7 = arith.addf %3, %6 : vector<2x32xf32>
    %c0_6 = arith.constant 0 : index
    %c0_7 = arith.constant 0 : index
    %8 = vector.load %arg7[%c0_6, %c0_7] : memref<2x32xf32, #tpu.memory_space<vmem>>, vector<2x32xf32>
    tpu.vector_store %arg7[%c0_6, %c0_7], %7 {strides = array<i32>} : memref<2x32xf32, #tpu.memory_space<vmem>>, vector<2x32xf32>,
    %c0_i32_8 = arith.constant 0 : i32
    %9 = arith.cmpi eq, %arg2, %c0_i32_8 : i32
    %10 = arith.extui %9 : i1 to i32
    %c0_i32_9 = arith.constant 0 : i32
    %11 = arith.cmpi ne, %10, %c0_i32_9 : i32
    scf.if %11 {
      %c0_10 = arith.constant 0 : index
      %c0_11 = arith.constant 0 : index
      %12 = vector.load %arg7[%c0_10, %c0_11] : memref<2x32xf32, #tpu.memory_space<vmem>>, vector<2x32xf32>
      %cst_12 = arith.constant 0.00174077658 : f32
      %13 = vector.broadcast %cst_12 : f32 to vector<2x32xf32>
      %14 = arith.mulf %12, %13 : vector<2x32xf32>
      %c0_13 = arith.constant 0 : index
      %c0_14 = arith.constant 0 : index
      %15 = vector.load %arg5[%c0_13, %c0_14] : memref<1x32xf32, #tpu.memory_space<vmem>>, vector<1x32xf32>
      %cst_15 = arith.constant 0.00999999977 : f32
      %16 = vector.broadcast %cst_15 : f32 to vector<1x32xf32>
      %17 = arith.mulf %15, %16 : vector<1x32xf32>
      %18 = vector.broadcast %17 : vector<1x32xf32> to vector<2x32xf32>
      %19 = arith.addf %14, %18 : vector<2x32xf32>
      %cst_16 = arith.constant 0.000000e+00 : f32
      %20 = vector.broadcast %cst_16 : f32 to vector<2x32xf32>
      %21 = arith.cmpf oge, %19, %20 : vector<2x32xf32>
      %cst_17 = arith.constant 2.000000e-01 : f32
      %22 = vector.broadcast %cst_17 : f32 to vector<2x32xf32>
      %23 = arith.mulf %22, %19 : vector<2x32xf32>
      %24 = arith.select %21, %19, %23 : vector<2x32xi1>, vector<2x32xf32>
      %c0_18 = arith.constant 0 : index
      %c0_19 = arith.constant 0 : index
      %25 = vector.load %arg6[%c0_18, %c0_19] : memref<2x32xf32, #tpu.memory_space<vmem>>, vector<2x32xf32>
      tpu.vector_store %arg6[%c0_18, %c0_19], %24 {strides = array<i32>} : memref<2x32xf32, #tpu.memory_space<vmem>>, vector<2x32xf32>,
    } else {
    }
    return
  }
  func.func @transform_0(%arg0: i32, %arg1: i32, %arg2: i32) -> (i32, i32) {
    %c0_i32 = arith.constant 0 : i32
    return %arg0, %arg2 : i32, i32
  }
  func.func @transform_1(%arg0: i32, %arg1: i32, %arg2: i32) -> (i32, i32) {
    %c0_i32 = arith.constant 0 : i32
    return %arg1, %arg2 : i32, i32
  }
  func.func @transform_2(%arg0: i32, %arg1: i32, %arg2: i32) -> (i32, i32) {
    %c0_i32 = arith.constant 0 : i32
    %c0_i32_0 = arith.constant 0 : i32
    return %c0_i32, %arg1 : i32, i32
  }
  func.func @transform_3(%arg0: i32, %arg1: i32, %arg2: i32) -> (i32, i32) {
    %c0_i32 = arith.constant 0 : i32
    return %arg0, %arg1 : i32, i32
  }
}

</mosaic_0001>

<bundles_post_ra>
// kernel: tpu_custom_call.1
= control target key start
LH: loop header
LB: loop body
LE: loop exit
PB: predicated region body
PF: predicated region fallthrough
CT: control target
= control target key end

     0   :  { %8 = vsyncpa [#allocation4], 0  ;;  %s263_s0 = inlined_call_operand.hbm [shape: bf16[2,33], index: 0, kind: input, shape index: {}]   ;;  %s264_s1 = inlined_call_operand.hbm [shape: bf16[32,33], index: 1, kind: input, shape index: {}]   ;;  %s265_s2 = inlined_call_operand.vmem [shape: f32[1,32], index: 2, kind: input, shape index: {}]   ;;  %s266_s3 = inlined_call_operand.hbm [shape: f32[2,32], index: 3, kind: output, shape index: {}]  }
   0x1   :  { %9 = vsyncpa [#allocation7], 0 }
   0x2   :  { %10 = vsyncpa [#allocation5], 0  ;;  %s16_s14 = sshll.u32 %s263_s0, 4  ;;  %s222_s15 = smov [#allocation3]   ;;  %s17_s14 = int_to_ptr.hbm [resolvable:$true] %s16_s14 }
   0x3   :  { %s18_s16 = sshll.u32 %s222_s15, 4  ;;  %s26_s19 = sshll.u32 %s264_s1, 4  ;;  %s19_s16 = int_to_ptr.vmem [resolvable:$true] %s18_s16  ;;  %s27_s19 = int_to_ptr.hbm [resolvable:$true] %s26_s19 }
   0x4   :  { %21 = dma.hbm_to_vmem [thread:$0]  %s17_s14, 16, %s19_s16, [#allocation4]  }
   0x5   :  { %s223_s20 = smov [#allocation6]   ;;  %s224_s22 = smov 64  }
   0x6   :  { %s28_s21 = sshll.u32 %s223_s20, 4  ;;  %s225_s23 = smov 4   ;;  %s29_s21 = int_to_ptr.vmem [resolvable:$true] %s28_s21 }
   0x7   :  { %34 = dma.hbm_to_vmem [thread:$0]  %s27_s19, 256, %s29_s21, [#allocation7], %s224_s22, %s224_s22, %s225_s23  }
   0x8   :  { %216 = dma.done.wait [#allocation4], 16  }
   0x9   :  { %217 = vsyncadd [#allocation4], 4294967280 }
   0xa   :  { %218 = dma.done.wait [#allocation7], 256  }
   0xb   :  { %219 = vsyncadd [#allocation7], 4294967040  ;;  %vm50_vm0 = vcmask 254976   ;;  %v226_v0 = vmov 0.0   ;;  %vm68_vm1 = vcmask 269312   ;;  %v137_v1 = vld [vmem:[#allocation6 + $0x8] sm:$0xff] }
   0xc   :  { %51 = vst.msk [vmem:[#allocation2] sm:$0x3] %vm50_vm0, %v226_v0  ;;  %v76_v2 = vsel %vm68_vm1, %v137_v1, 0  ;;  %v136_v3 = vld [vmem:[#allocation6] sm:$0xff]  ;;  %v53_v5 = vld [vmem:[#allocation3] sm:$0x1] }
   0xd   :  { %84 = vmatpush.bf16.xpose.msra.mxu0 %v76_v2  ;;  %v73_v4 = vsel %vm68_vm1, %v136_v3, 0  ;;  %v99_v9 = vld [vmem:[%s265_s2] sm:$0x1]  ;;  %s227_s24 = smov [#allocation8]   ;;  %s116_s28 = sshll.u32 %s266_s3, 4  ;;  %s117_s28 = int_to_ptr.hbm [resolvable:$true] %s116_s28 }
   0xe   :  { %v100_v10 = vmul.f32 0.01, %v99_v9  ;;  %s114_s25 = sshll.u32 %s227_s24, 4  ;;  %s115_s25 = int_to_ptr.vmem [resolvable:$true] %s114_s25 }
  0x10   :  { %v102_v12 = vperm.slane %v100_v10, 0 }
  0x13   :  { %v52_v6 = vld [vmem:[#allocation2] sm:$0x3] }
  0x15   :  { %85 = vmatpush.bf16.xpose.msra.mxu0 %v73_v4 }
  0x1c   :  { %135 = vmatmul.msk.bf16.vlgmr.msra.gmra.mxu0 %vm68_vm1, %v53_v5 }
  0x99   :  { %v87_v7 = vpop.f32.mrf.mxu0 }
  0x9a   :  { %v91_v8 = vadd.f32 %v87_v7, %v52_v6 }
  0x9c   :  { %93 = vst.msk [vmem:[#allocation2] sm:$0x3] %vm50_vm0, %v91_v8 }
  0xa1   :  { %v89_v11 = vpop.f32.mrf.mxu0 }
  0xa3   :  { %v97_v13 = vld [vmem:[#allocation2] sm:$0x3] }
  0xa4   :  { %v98_v14 = vmul.f32 0.0017407766, %v97_v13 }
  0xa6   :  { %v104_v15 = vadd.f32 %v102_v12, %v98_v14 }
  0xa8   :  { %vm105_vm2 = vcmp.ge.f32.partialorder %v104_v15, 0.0  ;;  %v106_v16 = vmul.f32 0.2, %v104_v15 }
  0xaa   :  { %v107_v17 = vsel %vm105_vm2, %v104_v15, %v106_v16 }
  0xab   :  { %108 = vst.msk [vmem:[#allocation8] sm:$0x3] %vm50_vm0, %v107_v17 }
  0xac   :  { %119 = dma.vmem_to_hbm [thread:$0]  %s115_s25, 32, %s117_s28, [#allocation5]  }
  0xad   :  { %220 = dma.done.wait [#allocation5], 32  }
  0xae   :  { %221 = vsyncadd [#allocation5], 4294967264 }
  0xaf   :  { %124 = vsyncpa [#allocation4], 1 }
  0xb0   :  { %125 = vsyncpa [#allocation7], 1 }
  0xb1   :  { %126 = vsyncpa [#allocation5], 1 }

</bundles_post_ra>
